<compile_context>
chip_gen: v6e
topology: v6e:2x2x1
jax: 0.10.0
libtpu: 0.0.40
codegen_flags: <defaults>
</compile_context>

<pallas_src>
import jax
import jax.numpy as jnp
from jax.experimental import pallas as pl
from jax.experimental.pallas import tpu as pltpu

LANES = 128
SUBLANES = 8


def _round_up(v, m):
    return (v + m - 1) // m * m


def _pad2(a, rows, cols, dtype):
    """Zero-pad a 2-D array up to (rows, cols) and cast to dtype."""
    r, c = a.shape
    return jnp.pad(a.astype(dtype), ((0, rows - r), (0, cols - c)))


def node_mlp_kernel(x_ref, w1_ref, b1_ref, w2_ref, b2_ref,
                    w3_ref, b3_ref, w4_ref, b4_ref, o_ref):
    # x arrives in its natural dtype (f32) and natural feature width f;
    # cast to bf16 for the MXU inside the kernel (hidden under DMA slack).
    x = x_ref[...].astype(jnp.bfloat16)                      # (TM, f)

    h = jnp.dot(x, w1_ref[...], preferred_element_type=jnp.float32) + b1_ref[...]
    h = jnp.maximum(h, 0.0).astype(jnp.bfloat16)             # ReLU in f32, cast for MXU

    h = jnp.dot(h, w2_ref[...], preferred_element_type=jnp.float32) + b2_ref[...]
    h = jnp.maximum(h, 0.0).astype(jnp.bfloat16)

    h = jnp.dot(h, w3_ref[...], preferred_element_type=jnp.float32) + b3_ref[...]
    h = jnp.maximum(h, 0.0).astype(jnp.bfloat16)

    out = jnp.dot(h, w4_ref[...], preferred_element_type=jnp.float32) + b4_ref[...]
    o_ref[...] = out.astype(o_ref.dtype)                     # only f valid columns hit HBM


def prepare_params(params):
    """One-time weight prep: pad hidden dim to 128 lanes, cast weights to bf16.

    Padding is numerically exact: padded weight columns/rows are zero, padded
    bias lanes are zero, so padded hidden activations are ReLU(0) = 0 and
    contribute nothing to later contractions. Input/output feature dims are
    kept at their natural size f (handled as full-dim blocks in the kernel).
    """
    w1, b1, w2, b2, w3, b3, w4, b4 = params
    f, h = w1.shape
    hp = _round_up(h, LANES)

    w1p = _pad2(w1, f, hp, jnp.bfloat16)
    w2p = _pad2(w2, hp, hp, jnp.bfloat16)
    w3p = _pad2(w3, hp, hp, jnp.bfloat16)
    w4p = _pad2(w4, hp, f, jnp.bfloat16)
    b1p = _pad2(b1.reshape(1, -1), 1, hp, jnp.float32)
    b2p = _pad2(b2.reshape(1, -1), 1, hp, jnp.float32)
    b3p = _pad2(b3.reshape(1, -1), 1, hp, jnp.float32)
    b4p = _pad2(b4.reshape(1, -1), 1, f, jnp.float32)
    return (w1p, b1p, w2p, b2p, w3p, b3p, w4p, b4p)


def node_decoder_forward(x, prepped_params, edge_index=None, edge_attr=None,
                         u=None, batch=None, *, tm=2048):
    """Pallas implementation of NodeDecoderModel.forward.

    edge_index / edge_attr / u / batch are accepted for signature parity but
    (exactly like the reference module) are not used.
    """
    del edge_index, edge_attr, u, batch
    w1p, b1p, w2p, b2p, w3p, b3p, w4p, b4p = prepped_params
    n, f = x.shape
    hp = w1p.shape[1]
    assert w1p.shape[0] == f and w4p.shape[1] == f

    # Row-tile selection:
    #  * Large N: big tiles (default 2048 rows) amortize the ~0.35 us/step
    #    pipeline overhead and push toward the HBM roofline.
    #  * Small N: clamp, but keep >= 2 grid steps whenever n > 8 so the
    #    "parallel" axis can shard across the 2 TensorCores on v7x.
    if n <= SUBLANES:
        tm = n                                            # single tiny block
    elif n <= tm:
        tm = min(_round_up(pl.cdiv(n, 2), SUBLANES), n)   # >= 2 grid steps
    grid = (pl.cdiv(n, tm),)

    out_dtype = x.dtype
    x_bytes = jnp.dtype(x.dtype).itemsize
    o_bytes = jnp.dtype(out_dtype).itemsize

    # Advisory cost estimate (flops dominated by the 4 matmuls).
    flops = 2 * n * (f * hp + 2 * hp * hp + hp * f)
    w_bytes = (f * hp + 2 * hp * hp + hp * f) * 2 + (3 * hp + f) * 4
    bytes_accessed = n * f * (x_bytes + o_bytes) + w_bytes
    cost = pl.CostEstimate(flops=int(flops), transcendentals=0,
                           bytes_accessed=int(bytes_accessed))

    # Scoped-VMEM budget: double-buffered x/out tiles + resident weights
    # (conservatively counted double-buffered) + f32/bf16 intermediates,
    # plus margin; floored at the 32 MiB default, capped at v7x physical.
    vmem_bytes = (2 * tm * f * (x_bytes + o_bytes)
                  + 2 * w_bytes
                  + tm * hp * (3 * 4 + 2 * 2))
    vmem_limit = int(min(max(vmem_bytes + (4 << 20), 32 << 20), 64 << 20))

    resident = lambda shape: pl.BlockSpec(shape, lambda i: (0, 0))

    out = pl.pallas_call(
        node_mlp_kernel,
        out_shape=jax.ShapeDtypeStruct((n, f), out_dtype),
        grid=grid,
        in_specs=[
            pl.BlockSpec((tm, f), lambda i: (i, 0)),   # x row tile (pipelined)
            resident(w1p.shape), resident(b1p.shape),  # w1, b1 (VMEM-resident)
            resident(w2p.shape), resident(b2p.shape),  # w2, b2
            resident(w3p.shape), resident(b3p.shape),  # w3, b3
            resident(w4p.shape), resident(b4p.shape),  # w4, b4
        ],
        out_specs=pl.BlockSpec((tm, f), lambda i: (i, 0)),
        compiler_params=pltpu.CompilerParams(
            dimension_semantics=("parallel",),
            vmem_limit_bytes=vmem_limit),
        cost_estimate=cost,
    )(x, w1p, b1p, w2p, b2p, w3p, b3p, w4p, b4p)

    return out


def init_params(key, feature_dim, hidden_dim, dtype=jnp.float32):
    """Deterministic synthetic weights (shapes match the torch module)."""
    ks = jax.random.split(key, 8)
    scale = 0.1

    def lin(kw, kb, d_in, d_out):
        w = scale * jax.random.normal(kw, (d_in, d_out), dtype)
        b = scale * jax.random.normal(kb, (1, d_out), dtype)
        return w, b

    w1, b1 = lin(ks[0], ks[1], feature_dim, hidden_dim)
    w2, b2 = lin(ks[2], ks[3], hidden_dim, hidden_dim)
    w3, b3 = lin(ks[4], ks[5], hidden_dim, hidden_dim)
    w4, b4 = lin(ks[6], ks[7], hidden_dim, feature_dim)
    return (w1, b1, w2, b2, w3, b3, w4, b4)


def reference_forward_f32(x, params):
    """Pure-f32 reference (the torch module's numerics)."""
    w1, b1, w2, b2, w3, b3, w4, b4 = params
    h = jnp.maximum(x @ w1 + b1, 0.0)
    h = jnp.maximum(h @ w2 + b2, 0.0)
    h = jnp.maximum(h @ w3 + b3, 0.0)
    return h @ w4 + b4


def reference_forward_bf16(x, params):
    """Reference mirroring the kernel's bf16-operand / f32-accum path."""
    w1, b1, w2, b2, w3, b3, w4, b4 = params

    def mm(a, w):
        return jnp.dot(a.astype(jnp.bfloat16), w.astype(jnp.bfloat16),
                       preferred_element_type=jnp.float32)

    h = jnp.maximum(mm(x, w1) + b1, 0.0)
    h = jnp.maximum(mm(h, w2) + b2, 0.0)
    h = jnp.maximum(mm(h, w3) + b3, 0.0)
    return mm(h, w4) + b4


if __name__ == "__main__":
    feature_dim = 32
    hidden_dim = 64
    num_nodes = 16          # "batch" of graph nodes
    num_edges = 24

    key = jax.random.PRNGKey(0)
    k_x, k_ei, k_ea, k_u, k_p = jax.random.split(key, 5)

    x = jax.random.normal(k_x, (num_nodes, feature_dim), jnp.float32)
    # Unused-by-forward auxiliary graph inputs (signature parity only):
    edge_index = jax.random.randint(k_ei, (2, num_edges), 0, num_nodes)
    edge_attr = jax.random.normal(k_ea, (num_edges, feature_dim), jnp.float32)
    u = jax.random.normal(k_u, (1, feature_dim), jnp.float32)
    batch = jnp.zeros((num_nodes,), jnp.int32)

    params = init_params(k_p, feature_dim, hidden_dim)
    prepped = prepare_params(params)   # one-time prep, hoisted out of the call path

    out = node_decoder_forward(x, prepped, edge_index, edge_attr, u, batch)
    out = jax.block_until_ready(out)
    assert out.shape == (num_nodes, feature_dim)
    assert out.dtype == x.dtype

    # Tight check vs. the bf16-operand / f32-accum reference (same math path).
    ref_bf16 = reference_forward_bf16(x, params)
    assert jnp.allclose(out, ref_bf16, atol=1e-3, rtol=1e-3)

    # Loose check vs. the original f32 module semantics (bf16 quantization).
    ref_f32 = reference_forward_f32(x, params)
    assert jnp.allclose(out, ref_f32, atol=5e-2, rtol=5e-2)

    print("KERNEL_OK")
</pallas_src>

<mosaic_0001>
module attributes {stable_mosaic.version = 11 : i64} {
  func.func @node_mlp_kernel(%arg0: i32, %arg1: memref<8x32xf32, #tpu.memory_space<vmem>>, %arg2: memref<32x128xbf16, #tpu.memory_space<vmem>>, %arg3: memref<1x128xf32, #tpu.memory_space<vmem>>, %arg4: memref<128x128xbf16, #tpu.memory_space<vmem>>, %arg5: memref<1x128xf32, #tpu.memory_space<vmem>>, %arg6: memref<128x128xbf16, #tpu.memory_space<vmem>>, %arg7: memref<1x128xf32, #tpu.memory_space<vmem>>, %arg8: memref<128x32xbf16, #tpu.memory_space<vmem>>, %arg9: memref<1x32xf32, #tpu.memory_space<vmem>>, %arg10: memref<8x32xf32, #tpu.memory_space<vmem>>) attributes {dimension_semantics = [#tpu.dimension_semantics<parallel>], iteration_bounds = array<i64: 2>, scalar_prefetch = 0 : i64, scratch_operands = 0 : i64, tpu.core_type = #tpu.core_type<tc>, window_params = [{transform_indices = @transform_0, window_bounds = array<i64: 8, 32>}, {pipeline_mode = #tpu.pipeline_mode<synchronous>, transform_indices = @transform_1, window_bounds = array<i64: 32, 128>}, {pipeline_mode = #tpu.pipeline_mode<synchronous>, transform_indices = @transform_2, window_bounds = array<i64: 1, 128>}, {pipeline_mode = #tpu.pipeline_mode<synchronous>, transform_indices = @transform_3, window_bounds = array<i64: 128, 128>}, {pipeline_mode = #tpu.pipeline_mode<synchronous>, transform_indices = @transform_4, window_bounds = array<i64: 1, 128>}, {pipeline_mode = #tpu.pipeline_mode<synchronous>, transform_indices = @transform_5, window_bounds = array<i64: 128, 128>}, {pipeline_mode = #tpu.pipeline_mode<synchronous>, transform_indices = @transform_6, window_bounds = array<i64: 1, 128>}, {pipeline_mode = #tpu.pipeline_mode<synchronous>, transform_indices = @transform_7, window_bounds = array<i64: 128, 32>}, {pipeline_mode = #tpu.pipeline_mode<synchronous>, transform_indices = @transform_8, window_bounds = array<i64: 1, 32>}, {transform_indices = @transform_9, window_bounds = array<i64: 8, 32>}]} {
    %c0 = arith.constant 0 : index
    %c0_0 = arith.constant 0 : index
    %0 = vector.load %arg1[%c0, %c0_0] : memref<8x32xf32, #tpu.memory_space<vmem>>, vector<8x32xf32>
    %1 = arith.truncf %0 : vector<8x32xf32> to vector<8x32xbf16>
    %c0_1 = arith.constant 0 : index
    %c0_2 = arith.constant 0 : index
    %2 = vector.load %arg2[%c0_1, %c0_2] : memref<32x128xbf16, #tpu.memory_space<vmem>>, vector<32x128xbf16>
    %cst = arith.constant dense<0.000000e+00> : vector<8x128xf32>
    %3 = tpu.matmul %1, %2, %cst {dimension_numbers = #tpu.dot_dimension_numbers<[1], [0], [0], [1], [0, 0, 1, 1], [], []>} : vector<8x32xbf16>, vector<32x128xbf16>, vector<8x128xf32> -> vector<8x128xf32>
    %c0_3 = arith.constant 0 : index
    %c0_4 = arith.constant 0 : index
    %4 = vector.load %arg3[%c0_3, %c0_4] : memref<1x128xf32, #tpu.memory_space<vmem>>, vector<1x128xf32>
    %5 = vector.broadcast %4 : vector<1x128xf32> to vector<8x128xf32>
    %6 = arith.addf %3, %5 : vector<8x128xf32>
    %cst_5 = arith.constant 0.000000e+00 : f32
    %7 = vector.broadcast %cst_5 : f32 to vector<8x128xf32>
    %8 = arith.maximumf %6, %7 : vector<8x128xf32>
    %9 = arith.truncf %8 : vector<8x128xf32> to vector<8x128xbf16>
    %c0_6 = arith.constant 0 : index
    %c0_7 = arith.constant 0 : index
    %10 = vector.load %arg4[%c0_6, %c0_7] : memref<128x128xbf16, #tpu.memory_space<vmem>>, vector<128x128xbf16>
    %cst_8 = arith.constant dense<0.000000e+00> : vector<8x128xf32>
    %11 = tpu.matmul %9, %10, %cst_8 {dimension_numbers = #tpu.dot_dimension_numbers<[1], [0], [0], [1], [0, 0, 1, 1], [], []>} : vector<8x128xbf16>, vector<128x128xbf16>, vector<8x128xf32> -> vector<8x128xf32>
    %c0_9 = arith.constant 0 : index
    %c0_10 = arith.constant 0 : index
    %12 = vector.load %arg5[%c0_9, %c0_10] : memref<1x128xf32, #tpu.memory_space<vmem>>, vector<1x128xf32>
    %13 = vector.broadcast %12 : vector<1x128xf32> to vector<8x128xf32>
    %14 = arith.addf %11, %13 : vector<8x128xf32>
    %cst_11 = arith.constant 0.000000e+00 : f32
    %15 = vector.broadcast %cst_11 : f32 to vector<8x128xf32>
    %16 = arith.maximumf %14, %15 : vector<8x128xf32>
    %17 = arith.truncf %16 : vector<8x128xf32> to vector<8x128xbf16>
    %c0_12 = arith.constant 0 : index
    %c0_13 = arith.constant 0 : index
    %18 = vector.load %arg6[%c0_12, %c0_13] : memref<128x128xbf16, #tpu.memory_space<vmem>>, vector<128x128xbf16>
    %cst_14 = arith.constant dense<0.000000e+00> : vector<8x128xf32>
    %19 = tpu.matmul %17, %18, %cst_14 {dimension_numbers = #tpu.dot_dimension_numbers<[1], [0], [0], [1], [0, 0, 1, 1], [], []>} : vector<8x128xbf16>, vector<128x128xbf16>, vector<8x128xf32> -> vector<8x128xf32>
    %c0_15 = arith.constant 0 : index
    %c0_16 = arith.constant 0 : index
    %20 = vector.load %arg7[%c0_15, %c0_16] : memref<1x128xf32, #tpu.memory_space<vmem>>, vector<1x128xf32>
    %21 = vector.broadcast %20 : vector<1x128xf32> to vector<8x128xf32>
    %22 = arith.addf %19, %21 : vector<8x128xf32>
    %cst_17 = arith.constant 0.000000e+00 : f32
    %23 = vector.broadcast %cst_17 : f32 to vector<8x128xf32>
    %24 = arith.maximumf %22, %23 : vector<8x128xf32>
    %25 = arith.truncf %24 : vector<8x128xf32> to vector<8x128xbf16>
    %c0_18 = arith.constant 0 : index
    %c0_19 = arith.constant 0 : index
    %26 = vector.load %arg8[%c0_18, %c0_19] : memref<128x32xbf16, #tpu.memory_space<vmem>>, vector<128x32xbf16>
    %cst_20 = arith.constant dense<0.000000e+00> : vector<8x32xf32>
    %27 = tpu.matmul %25, %26, %cst_20 {dimension_numbers = #tpu.dot_dimension_numbers<[1], [0], [0], [1], [0, 0, 1, 1], [], []>} : vector<8x128xbf16>, vector<128x32xbf16>, vector<8x32xf32> -> vector<8x32xf32>
    %c0_21 = arith.constant 0 : index
    %c0_22 = arith.constant 0 : index
    %28 = vector.load %arg9[%c0_21, %c0_22] : memref<1x32xf32, #tpu.memory_space<vmem>>, vector<1x32xf32>
    %29 = vector.broadcast %28 : vector<1x32xf32> to vector<8x32xf32>
    %30 = arith.addf %27, %29 : vector<8x32xf32>
    %c0_23 = arith.constant 0 : index
    %c0_24 = arith.constant 0 : index
    %31 = vector.load %arg10[%c0_23, %c0_24] : memref<8x32xf32, #tpu.memory_space<vmem>>, vector<8x32xf32>
    tpu.vector_store %arg10[%c0_23, %c0_24], %30 {strides = array<i32>} : memref<8x32xf32, #tpu.memory_space<vmem>>, vector<8x32xf32>,
    return
  }
  func.func @transform_0(%arg0: i32) -> (i32, i32) {
    %c0_i32 = arith.constant 0 : i32
    %c0_i32_0 = arith.constant 0 : i32
    return %arg0, %c0_i32 : i32, i32
  }
  func.func @transform_1(%arg0: i32) -> (i32, i32) {
    %c0_i32 = arith.constant 0 : i32
    %c0_i32_0 = arith.constant 0 : i32
    %c0_i32_1 = arith.constant 0 : i32
    return %c0_i32, %c0_i32_0 : i32, i32
  }
  func.func @transform_2(%arg0: i32) -> (i32, i32) {
    %c0_i32 = arith.constant 0 : i32
    %c0_i32_0 = arith.constant 0 : i32
    %c0_i32_1 = arith.constant 0 : i32
    return %c0_i32, %c0_i32_0 : i32, i32
  }
  func.func @transform_3(%arg0: i32) -> (i32, i32) {
    %c0_i32 = arith.constant 0 : i32
    %c0_i32_0 = arith.constant 0 : i32
    %c0_i32_1 = arith.constant 0 : i32
    return %c0_i32, %c0_i32_0 : i32, i32
  }
  func.func @transform_4(%arg0: i32) -> (i32, i32) {
    %c0_i32 = arith.constant 0 : i32
    %c0_i32_0 = arith.constant 0 : i32
    %c0_i32_1 = arith.constant 0 : i32
    return %c0_i32, %c0_i32_0 : i32, i32
  }
  func.func @transform_5(%arg0: i32) -> (i32, i32) {
    %c0_i32 = arith.constant 0 : i32
    %c0_i32_0 = arith.constant 0 : i32
    %c0_i32_1 = arith.constant 0 : i32
    return %c0_i32, %c0_i32_0 : i32, i32
  }
  func.func @transform_6(%arg0: i32) -> (i32, i32) {
    %c0_i32 = arith.constant 0 : i32
    %c0_i32_0 = arith.constant 0 : i32
    %c0_i32_1 = arith.constant 0 : i32
    return %c0_i32, %c0_i32_0 : i32, i32
  }
  func.func @transform_7(%arg0: i32) -> (i32, i32) {
    %c0_i32 = arith.constant 0 : i32
    %c0_i32_0 = arith.constant 0 : i32
    %c0_i32_1 = arith.constant 0 : i32
    return %c0_i32, %c0_i32_0 : i32, i32
  }
  func.func @transform_8(%arg0: i32) -> (i32, i32) {
    %c0_i32 = arith.constant 0 : i32
    %c0_i32_0 = arith.constant 0 : i32
    %c0_i32_1 = arith.constant 0 : i32
    return %c0_i32, %c0_i32_0 : i32, i32
  }
  func.func @transform_9(%arg0: i32) -> (i32, i32) {
    %c0_i32 = arith.constant 0 : i32
    %c0_i32_0 = arith.constant 0 : i32
    return %arg0, %c0_i32 : i32, i32
  }
}

</mosaic_0001>

<bundles_post_ra>
// kernel: tpu_custom_call.1
= control target key start
LH: loop header
LB: loop body
LE: loop exit
PB: predicated region body
PF: predicated region fallthrough
CT: control target
= control target key end

     0   :  { %14 = vsyncpa [#allocation3], 0  ;;  %s1511_s0 = inlined_call_operand.vmem [shape: f32[16,32], index: 0, kind: input, shape index: {}]   ;;  %s1512_s1 = inlined_call_operand.hbm [shape: bf16[32,128], index: 1, kind: input, shape index: {}]   ;;  %s1513_s2 = inlined_call_operand.vmem [shape: f32[1,128], index: 2, kind: input, shape index: {}]   ;;  %s1514_s3 = inlined_call_operand.vmem [shape: bf16[128,128], index: 3, kind: input, shape index: {}]   ;;  %s1515_s4 = inlined_call_operand.vmem [shape: f32[1,128], index: 4, kind: input, shape index: {}]   ;;  %s1516_s5 = inlined_call_operand.hbm [shape: bf16[128,128], index: 5, kind: input, shape index: {}]   ;;  %s1517_s6 = inlined_call_operand.vmem [shape: f32[1,128], index: 6, kind: input, shape index: {}]   ;;  %s1518_s7 = inlined_call_operand.vmem [shape: bf16[128,32], index: 7, kind: input, shape index: {}]   ;;  %s1519_s8 = inlined_call_operand.vmem [shape: f32[1,32], index: 8, kind: input, shape index: {}]   ;;  %s1520_s9 = inlined_call_operand.hbm [shape: f32[16,32], index: 9, kind: output, shape index: {}]  }
   0x1   :  { %15 = vsyncpa [#allocation6], 0 }
   0x2   :  { %16 = vsyncpa [#allocation4], 0 }
   0x3   :  { %18 = vsyncpa [#allocation4 + $0x1], 0  ;;  %s1275_s30 = smov 0   ;;  %s1277_s10 = smov 0  }
   0x4   :  { %s1279_s11 = smov 0   ;;  %s1281_s12 = smov 0  }
   0x5 LB: > { %s1296_s13 = sadd.s32 4294967295, %s1216_s12   ;;  %s863_s14 = sadd.s32 4294967294, %s1216_s12   ;;  %s1216_s12 = sphi %s1281_s12, %s1534_s12   ;;  %s1212_s11 = sphi %s1279_s11, %s1533_s11   ;;  %s1208_s10 = sphi %s1277_s10, %s1532_s10   ;;  %s1204_s30 = sphi %s1275_s30, %s1531_s30  }
   0x6   : > { %s1300_s15 = sadd.s32 1, %s1216_s12   ;;  %s225_s16 = sadd.s32 1, %s1212_s11 }
   0x7   : > { %s222_s17 = ssub.s32 %s1216_s12, %s1300_s15  ;;  %p235_p0 = scmp.ne.s32.totalorder %s1212_s11, %s1208_s10 }
   0x8   : > { %p223_p1 = scmp.eq.s32.totalorder %s222_s17, 0  ;;  %p236_p2 = scmp.eq.s32.totalorder %s1296_s13, 1 }
   0x9   : > { %p241_p3 = scmp.ne.s32.totalorder %s1208_s10, %s1204_s30  ;;  %p242_p4 = scmp.eq.s32.totalorder %s863_s14, 1 }
   0xa   : > { %s1311_s18 = scalar_select %p223_p1, %s1212_s11, %s225_s16  }
   0xb   : > { %p1313_p5 = por %p236_p2, %p235_p0  ;;  %p1317_p6 = por %p242_p4, %p241_p3 }
   0xc   : > { %p864_p7 = scmp.ge.s32.totalorder %s1216_s12, 1  ;;  %p249_p8 = scmp.lt.s32.totalorder %s1216_s12, 3 }
   0xd   : > { %s1523_s20 = scalar_select %p1317_p6, 1, 0 }
   0xe   : > { %p1521_p9 = scmp.eq.s32.totalorder %s1296_s13, 0  ;;  %p1324_p10 = pnand %p864_p7, %p249_p8 }
   0xf   : > { %s1218_s22 = smov [#allocation2]   ;;  %s1219_s25 = smov [#allocation5]  }
  0x10   : > { %s261_s23 = sshll.u32 %s1218_s22, 4  ;;  %p1016_p11 = pneg %p1324_p10  ;;  %s262_s23 = int_to_ptr.vmem [resolvable:$true] %s261_s23 }
  0x11   : > { %s283_s26 = sshll.u32 %s1219_s25, 4  ;;  %s1107_s27 = scalar_lea.vmem %s262_s23, 256  ;;  %s284_s26 = int_to_ptr.vmem [resolvable:$true] %s283_s26 }
  0x12   : > { %p1332_p12 = pnand %p1521_p9, %p1016_p11  ;;  %p1108_p0 = scmp.ne.s32.totalorder %s262_s23, %s1107_s27 }
  0x13   : > { %p1115_p3 = scmp.lt.s32.totalorder %s262_s23, %s262_s23  ;;  %p1116_p4 = scmp.lt.s32.totalorder %s1107_s27, %s1107_s27 }
  0x14   : > { %p1098_p13 = pneg %p1332_p12 }
  0x15   : > { %p1117_p7 = por %p1116_p4, %p1115_p3 }
  0x16   : > { %p1110_p1 = pnand %p1108_p0, %p1098_p13 }
  0x18   : > { %p1111_p2 = pneg %p1110_p1 }
  0x1a   : > { %p1118_p8 = pnand %p1117_p7, %p1111_p2 }
  0x1c   : > { %1121 = shalt.err (!%p1118_p8)
}
  0x1d   : > { %s1220_s28 = smov 64   ;;  %s1221_s29 = smov 4  }
  0x1e   : > { %1019 = dma.hbm_to_vmem [thread:$0]  (!%p1332_p12), %s1512_s1, 256, %s262_s23, [#allocation3], %s1220_s28, %s1220_s28, %s1221_s29  }
  0x1f   : > { %s1133_s17 = scalar_lea.vmem %s284_s26, 1024  ;;  %p1141_p9 = scmp.lt.s32.totalorder %s284_s26, %s284_s26 }
  0x20   : > { %p1134_p11 = scmp.ne.s32.totalorder %s284_s26, %s1133_s17  ;;  %p1142_p6 = scmp.lt.s32.totalorder %s1133_s17, %s1133_s17 }
  0x22   : > { %p1136_p0 = pnand %p1134_p11, %p1098_p13  ;;  %p1143_p3 = por %p1142_p6, %p1141_p9 }
  0x24   : > { %p1137_p1 = pneg %p1136_p0 }
  0x26   : > { %p1144_p2 = pnand %p1143_p3, %p1137_p1 }
  0x28   : > { %1147 = shalt.err (!%p1144_p2)
}
  0x29   : > { %1022 = dma.hbm_to_vmem [thread:$0]  (!%p1332_p12), %s1516_s5, 1024, %s284_s26, [#allocation6], %s1220_s28, %s1220_s28, %s1221_s29  }
  0x2a   : > { %315 = sbr.rel (%p1324_p10) target bundleno = 867 (0x363), region = 56  ;;  %p1526_p4 = scmp.eq.s32.totalorder (!%p1324_p10), %s1296_s13, 0 }
  0x2f   : > { %1191 = dma.done.wait (%p1526_p4), [#allocation3], 256   ;;  %p1527_p13 = pmov %p1526_p4 }
  0x30   : > { %p1528_p7 = pmov %p1526_p4 }
  0x31   : > { %1193 = vsyncadd (%p1527_p13), [#allocation3], 4294967040 }
  0x32   : > { %1195 = dma.done.wait (%p1528_p7), [#allocation6], 1024   ;;  %p1529_p6 = pmov %p1526_p4 }
  0x33   : > { %p354_p9 = scmp.lt.s32.totalorder %s1296_s13, 1  ;;  %v1222_v0 = vmov 0.0   ;;  %vm1223_vm0 = vmmov 0   ;;  %v1070_v1 = vld [vmem:[#allocation2 + $0x8] sm:$0xff]   ;;  %v1071_v2 = vld [vmem:[#allocation2] sm:$0xff]   ;;  %v1072_v4 = vld [vmem:[%s1514_s3 + $0x38] sm:$0xff]  }
  0x34   : > { %1197 = vsyncadd (%p1529_p6), [#allocation6], 4294966272  ;;  %938 = vmatprep.subr.bf16.mxu0 %v1222_v0  ;;  %942 = vmatprep.mubr.msk.bf16.mxu0 %vm1223_vm0, %v1222_v0  ;;  %v1073_v6 = vld [vmem:[%s1514_s3 + $0x30] sm:$0xff]   ;;  %vm384_vm1 = vcmask 261120   ;;  %v1074_v7 = vld [vmem:[%s1514_s3 + $0x28] sm:$0xff]   ;;  %s351_s14 = sand.u32 1, %s1208_s10  }
  0x35   : > { %s355_s21 = scalar_select %p354_p9, %s1296_s13, 1  ;;  %946 = vmatprep.subr.bf16.mxu1 %v1222_v0  ;;  %962 = vmatprep.mubr.msk.bf16.mxu1 %vm1223_vm0, %v1222_v0  ;;  %v1075_v8 = vld [vmem:[%s1514_s3 + $0x20] sm:$0xff]   ;;  %v1076_v9 = vld [vmem:[%s1514_s3 + $0x18] sm:$0xff]   ;;  %v1077_v10 = vld [vmem:[%s1514_s3 + $0x10] sm:$0xff]  }
  0x36   : > { %939 = vmatpush3.bf16.msra.mxu0 %v1070_v1  ;;  %947 = vmatpush3.bf16.msra.mxu1 %v1072_v4  ;;  %v1078_v11 = vld [vmem:[%s1514_s3 + $0x8] sm:$0xff]   ;;  %v1079_v12 = vld [vmem:[%s1514_s3] sm:$0xff]   ;;  %v1082_v15 = vld [vmem:[#allocation5 + $0x28] sm:$0xff]   ;;  %s871_s16 = sshll.u32 %s351_s14, 3  ;;  %s905_s25 = sshll.u32 %s1296_s13, 7 }
  0x37   : > { %s872_s23 = sshll.u32 %s355_s21, 3  ;;  %940 = vmatprep.subr.bf16.mxu0 %v1222_v0  ;;  %948 = vmatprep.subr.bf16.mxu1 %v1222_v0  ;;  %v1080_v13 = vld [vmem:[#allocation5 + $0x38] sm:$0xff]   ;;  %v1081_v14 = vld [vmem:[#allocation5 + $0x30] sm:$0xff]   ;;  %v1083_v16 = vld [vmem:[#allocation5 + $0x20] sm:$0xff]   ;;  %s353_s21 = scalar_lea.vmem [#allocation7], %s871_s16 }
  0x38   : > { %s357_s27 = scalar_lea.vmem %s1511_s0, %s872_s23  ;;  %v1084_v17 = vld [vmem:[#allocation5 + $0x18] sm:$0xff]   ;;  %v1085_v18 = vld [vmem:[#allocation5 + $0x10] sm:$0xff]   ;;  %v1086_v27 = vld [vmem:[#allocation5 + $0x8] sm:$0xff]   ;;  %s782_s23 = sshll.u32 %s353_s21, 4  ;;  %s1471_s23 = int_to_ptr.vmem [resolvable:$true] %s782_s23 }
  0x39   : > { %v359_v3 = vld [vmem:[%s357_s27] sm:$0xff]  ;;  %v1087_v28 = vld [vmem:[#allocation5] sm:$0xff]   ;;  %v1088_v29 = vld [vmem:[%s1518_s7 + $0x38] sm:$0xff]   ;;  %s1469_s27 = scalar_lea.hbm %s1520_s9, %s905_s25  ;;  %s769_s28 = scalar_lea.sflag [#allocation4], %s351_s14 }
  0x3a   : > { %v360_v5 = vpack.c.bf16 %v359_v3, %v359_v3  ;;  %941 = vmatpush3.bf16.msra.mxu0 %v1071_v2  ;;  %949 = vmatpush3.bf16.msra.mxu1 %v1073_v6  ;;  %v873_v19 = vld [vmem:[%s1513_s2] ss:$0 sm:$0xff]  ;;  %v1089_v30 = vld [vmem:[%s1518_s7 + $0x30] sm:$0xff]   ;;  %v1090_v31 = vld [vmem:[%s1518_s7 + $0x28] sm:$0xff]   ;;  %s1148_s13 = scalar_lea.vmem %s1471_s23, 128  ;;  %s1224_s29 = smov [#allocation7]  }
  0x3b   : > { %966 = vmatprep.subr.bf16.mxu0 %v1222_v0  ;;  %950 = vmatprep.subr.bf16.mxu1 %v1222_v0  ;;  %v1091_v32 = vld [vmem:[%s1518_s7 + $0x20] sm:$0xff]   ;;  %v1092_v33 = vld [vmem:[%s1518_s7 + $0x18] sm:$0xff]   ;;  %v1093_v34 = vld [vmem:[%s1518_s7 + $0x10] sm:$0xff]   ;;  %p1149_p10 = scmp.ne.s32.totalorder %s1471_s23, %s1148_s13  ;;  %s1152_s16 = sshll.u32 %s1224_s29, 4  ;;  %s1153_s16 = int_to_ptr.vmem [resolvable:$false] %s1152_s16 }
  0x3c   : > { %v877_v35 = vld [vmem:[%s1515_s4] ss:$0 sm:$0xff]  ;;  %v1094_v43 = vld [vmem:[%s1518_s7 + $0x8] sm:$0xff]   ;;  %s1154_s17 = scalar_lea.vmem %s1153_s16, 256  ;;  %p1155_p11 = scmp.lt.s32.totalorder %s1471_s23, %s1153_s16 }
  0x3d   : > { %943 = vmatmul.mubr.msk.bf16.vlgmr.msra.gmra.mxu0 %vm384_vm1, %v360_v5  ;;  %v1095_v44 = vld [vmem:[%s1518_s7] sm:$0xff]   ;;  %p1150_p12 = pnand %p1149_p10, %p1313_p5  ;;  %p1156_p0 = scmp.lt.s32.totalorder %s1154_s17, %s1148_s13 }
  0x3e   : > { %982 = vmatprep.mubr.msk.bf16.mxu0 %vm1223_vm0, %v1222_v0  ;;  %951 = vmatpush3.bf16.msra.mxu1 %v1074_v7  ;;  %v886_v45 = vld [vmem:[%s1517_s6] ss:$0 sm:$0xff] }
  0x3f   : > { %952 = vmatprep.subr.bf16.mxu1 %v1222_v0  ;;  %967 = vmatpush3.bf16.msra.mxu0 %v1080_v13  ;;  %v895_v53 = vld [vmem:[%s1519_s8] ss:$0 sm:$0xff]  ;;  %p1151_p8 = pneg %p1150_p12  ;;  %p1157_p1 = por %p1156_p0, %p1155_p11 }
  0x40   : > { %968 = vmatprep.subr.bf16.mxu0 %v1222_v0 }
  0x41   : > { %p1158_p3 = pnand %p1157_p1, %p1151_p8 }
  0x42   : > { %953 = vmatpush3.bf16.msra.mxu1 %v1075_v8 }
  0x43   : > { %954 = vmatprep.subr.bf16.mxu1 %v1222_v0  ;;  %969 = vmatpush3.bf16.msra.mxu0 %v1081_v14 }
  0x44   : > { %970 = vmatprep.subr.bf16.mxu0 %v1222_v0 }
  0x46   : > { %955 = vmatpush3.bf16.msra.mxu1 %v1076_v9 }
  0x47   : > { %956 = vmatprep.subr.bf16.mxu1 %v1222_v0  ;;  %971 = vmatpush3.bf16.msra.mxu0 %v1082_v15 }
  0x48   : > { %972 = vmatprep.subr.bf16.mxu0 %v1222_v0 }
  0x4a   : > { %957 = vmatpush3.bf16.msra.mxu1 %v1077_v10 }
  0x4b   : > { %958 = vmatprep.subr.bf16.mxu1 %v1222_v0  ;;  %973 = vmatpush3.bf16.msra.mxu0 %v1083_v16 }
  0x4c   : > { %974 = vmatprep.subr.bf16.mxu0 %v1222_v0 }
  0x4e   : > { %959 = vmatpush3.bf16.msra.mxu1 %v1078_v11 }
  0x4f   : > { %960 = vmatprep.subr.bf16.mxu1 %v1222_v0  ;;  %975 = vmatpush3.bf16.msra.mxu0 %v1084_v17 }
  0x50   : > { %976 = vmatprep.subr.bf16.mxu0 %v1222_v0 }
  0x52   : > { %961 = vmatpush3.bf16.msra.mxu1 %v1079_v12 }
  0x53   : > { %986 = vmatprep.subr.bf16.mxu1 %v1222_v0  ;;  %977 = vmatpush3.bf16.msra.mxu0 %v1085_v18 }
  0x54   : > { %978 = vmatprep.subr.bf16.mxu0 %v1222_v0 }
  0x57   : > { %979 = vmatpush3.bf16.msra.mxu0 %v1086_v27 }
  0x58   : > { %980 = vmatprep.subr.bf16.mxu0 %v1222_v0 }
  0x5b   : > { %981 = vmatpush3.bf16.msra.mxu0 %v1087_v28 }
  0xfd   : > { %v422_v20 = vpop.f32.mrf.mxu0 }
  0xfe   : > { %v423_v21 = vadd.f32 %v873_v19, %v422_v20 }
  0xff   : > { %v944_v22 = vpop.f32.mrf.mxu0 }
 0x100   : > { %v428_v23 = vmax.f32 %v423_v21, 0.0 }
 0x101   : > { %v425_v24 = vpop.f32.mrf.mxu0 }
 0x102   : > { %v429_v25 = vpack.c.bf16 %v428_v23, %v428_v23 }
 0x103   : > { %v945_v26 = vpop.f32.mrf.mxu0 }
 0x104   : > { %963 = vmatmul.mubr.bf16.vlgmr.msra.gmra.mxu1 %v429_v25 }
 0x105   : > { %1002 = vmatprep.mubr.msk.bf16.mxu1 %vm1223_vm0, %v1222_v0  ;;  %987 = vmatpush3.bf16.msra.mxu1 %v1088_v29 }
 0x106   : > { %988 = vmatprep.subr.bf16.mxu1 %v1222_v0 }
 0x109   : > { %989 = vmatpush3.bf16.msra.mxu1 %v1089_v30 }
 0x10a   : > { %990 = vmatprep.subr.bf16.mxu1 %v1222_v0 }
 0x10d   : > { %991 = vmatpush3.bf16.msra.mxu1 %v1090_v31 }
 0x10e   : > { %992 = vmatprep.subr.bf16.mxu1 %v1222_v0 }
 0x111   : > { %993 = vmatpush3.bf16.msra.mxu1 %v1091_v32 }
 0x112   : > { %994 = vmatprep.subr.bf16.mxu1 %v1222_v0 }
 0x115   : > { %995 = vmatpush3.bf16.msra.mxu1 %v1092_v33 }
 0x116   : > { %996 = vmatprep.subr.bf16.mxu1 %v1222_v0 }
 0x119   : > { %997 = vmatpush3.bf16.msra.mxu1 %v1093_v34 }
 0x11a   : > { %998 = vmatprep.subr.bf16.mxu1 %v1222_v0 }
 0x11d   : > { %999 = vmatpush3.bf16.msra.mxu1 %v1094_v43 }
 0x11e   : > { %1000 = vmatprep.subr.bf16.mxu1 %v1222_v0 }
 0x121   : > { %1001 = vmatpush3.bf16.msra.mxu1 %v1095_v44 }
 0x1c4   : > { %v535_v36 = vpop.f32.mrf.mxu1 }
 0x1c5   : > { %v536_v37 = vadd.f32 %v877_v35, %v535_v36 }
 0x1c6   : > { %v964_v38 = vpop.f32.mrf.mxu1 }
 0x1c7   : > { %v541_v39 = vmax.f32 %v536_v37, 0.0 }
 0x1c8   : > { %v538_v40 = vpop.f32.mrf.mxu1 }
 0x1c9   : > { %v542_v41 = vpack.c.bf16 %v541_v39, %v541_v39 }
 0x1ca   : > { %v965_v42 = vpop.f32.mrf.mxu1 }
 0x1cb   : > { %983 = vmatmul.mubr.bf16.vlgmr.msra.gmra.mxu0 %v542_v41 }
 0x28b   : > { %v648_v46 = vpop.f32.mrf.mxu0 }
 0x28c   : > { %v649_v47 = vadd.f32 %v886_v45, %v648_v46 }
 0x28d   : > { %v984_v48 = vpop.f32.mrf.mxu0 }
 0x28e   : > { %v654_v49 = vmax.f32 %v649_v47, 0.0 }
 0x28f   : > { %v651_v50 = vpop.f32.mrf.mxu0 }
 0x290   : > { %v655_v51 = vpack.c.bf16 %v654_v49, %v654_v49 }
 0x291   : > { %v985_v52 = vpop.f32.mrf.mxu0 }
 0x292   : > { %1003 = vmatmul.mubr.bf16.vlgmr.msra.gmra.mxu1 %v655_v51 }
 0x352   : > { %v761_v54 = vpop.f32.mrf.mxu1 }
 0x353   : > { %v762_v55 = vadd.f32 %v895_v53, %v761_v54 }
 0x354   : > { %v1004_v56 = vpop.f32.mrf.mxu1 }
 0x355   : > { %767 = vst.msk [vmem:[%s353_s21] sm:$0xff] %vm384_vm1, %v762_v55 }
 0x356   : > { %v764_v57 = vpop.f32.mrf.mxu1 }
 0x357   : > { %1161 = shalt.err (!%p1158_p3)
}
 0x358   : > { %s1162_s22 = scalar_lea.hbm %s1469_s27, 128  ;;  %s1166_s21 = scalar_lea.hbm %s1520_s9, 256 }
 0x359   : > { %p1163_p2 = scmp.ne.s32.totalorder %s1469_s27, %s1162_s22  ;;  %p1167_p7 = scmp.lt.s32.totalorder %s1469_s27, %s1520_s9 }
 0x35a   : > { %p1168_p6 = scmp.lt.s32.totalorder %s1166_s21, %s1162_s22 }
 0x35b   : > { %p1164_p4 = pnand %p1163_p2, %p1313_p5 }
 0x35c   : > { %p1169_p9 = por %p1168_p6, %p1167_p7 }
 0x35d   : > { %p1165_p13 = pneg %p1164_p4 }
 0x35f   : > { %p1170_p10 = pnand %p1169_p9, %p1165_p13 }
 0x361   : > { %1173 = shalt.err (!%p1170_p10)
}
 0x362   : > { %1014 = dma.vmem_to_hbm [thread:$0]  (%p1313_p5), %s1471_s23, 128, %s1469_s27, %s769_s28   ;;  %v1005_v58 = vpop.f32.mrf.mxu1 }
 0x363 PF: > { %p1031_p12 = scmp.ge.s32.totalorder %s1216_s12, 2  ;;  %s794_s13 = sand.u32 1, %s1204_s30  }
 0x364   : > { %p1530_p8 = scmp.ne.s32.totalorder %s1523_s20, 0  ;;  %s795_s29 = scalar_lea.sflag [#allocation4], %s794_s13 }
 0x366   : > { %p1024_p11 = pnand %p1031_p12, %p1530_p8 }
 0x368   : > { %p1025_p0 = pneg %p1024_p11 }
 0x36a   : > { %1199 = dma.done.wait (%p1025_p0), %s795_s29, 128  }
 0x36b   : > { %1201 = vsyncadd (%p1025_p0), %s795_s29, 4294967168  ;;  %p21_p1 = scmp.ge.s32.totalorder %s1300_s15, 4   ;;  %s1531_s30 = smov %s1208_s10 }
 0x36c   : > { %s1532_s10 = smov %s1212_s11  ;;  %s1533_s11 = smov %s1311_s18 }
 0x36d   : > { %s1534_s12 = smov %s1300_s15  ;;  %23 = sbr.rel (!%p21_p1) target bundleno = 5 (0x5), region = 100 }
 0x372   :  { %800 = vsyncpa [#allocation3], 1 }
 0x373   :  { %802 = vsyncpa [#allocation3 + $0x1], 1 }
 0x374   :  { %803 = vsyncpa [#allocation6], 1 }
 0x375   :  { %804 = vsyncpa [#allocation4], 1 }
 0x376   :  { %806 = vsyncpa [#allocation4 + $0x1], 1 }

</bundles_post_ra>
